<compile_context>
chip_gen: v7x
topology: tpu7x:2x2x1
jax: 0.10.0
libtpu: 0.0.40
codegen_flags: <defaults>
</compile_context>

<pallas_src>
import jax
import jax.numpy as jnp
from jax.experimental import pallas as pl
from jax.experimental.pallas import tpu as pltpu

_LANE = 128


def _gated_activation_kernel(x_ref, o_ref):
    # x_ref: (1, 2, c_half, tile_hw)   o_ref: (1, c_half, tile_hw)
    f = x_ref[0, 0, :, :].astype(jnp.float32)   # top half of the channels
    g = x_ref[0, 1, :, :].astype(jnp.float32)   # bottom half (gate)
    # sigmoid(g) == 0.5 * (1 + tanh(0.5 * g)); two tanh pushes total on the EUP.
    gate = 0.5 * (jnp.tanh(0.5 * g) + 1.0)
    o_ref[0, :, :] = (jnp.tanh(f) * gate).astype(o_ref.dtype)


def gated_activation(x, *, tile_hw_cap=2048, vmem_step_budget=8 << 20):
    """x: (N, C, H, W) array, C even. Returns tanh(f) * sigmoid(g), shape (N, C//2, H, W)."""
    n, c, h, w = x.shape
    assert c % 2 == 0, "x must have an even number of channels."
    c_half = c // 2
    hw = h * w

    # Split the gate on a leading axis: x_split[:, 0] == x[:, :c//2], x_split[:, 1] == x[:, c//2:].
    x_split = x.reshape(n, 2, c_half, hw)

    # Lane-pad HW to a multiple of 128 so every load/store is lane-dense.
    hw_pad = ((hw + _LANE - 1) // _LANE) * _LANE
    if hw_pad != hw:
        x_split = jnp.pad(x_split, ((0, 0), (0, 0), (0, 0), (0, hw_pad - hw)))

    # Pick the HW tile: multiple of 128, <= tile_hw_cap, and small enough that one
    # grid step (double-buffered input (2*c_half rows) + output (c_half rows)) fits
    # the per-step VMEM budget on every TPU generation.
    itemsize = jnp.dtype(x.dtype).itemsize

    def _step_bytes(t):
        return 2 * (2 * c_half + c_half) * t * itemsize  # 2x for double buffering

    tile_hw = min(hw_pad, tile_hw_cap)
    while tile_hw > _LANE and _step_bytes(tile_hw) > vmem_step_budget:
        tile_hw -= _LANE
    num_hw_tiles = pl.cdiv(hw_pad, tile_hw)

    out_flat = pl.pallas_call(
        _gated_activation_kernel,
        out_shape=jax.ShapeDtypeStruct((n, c_half, hw_pad), x.dtype),
        grid=(n, num_hw_tiles),
        in_specs=[
            pl.BlockSpec((1, 2, c_half, tile_hw), lambda i, j: (i, 0, 0, j)),
        ],
        out_specs=pl.BlockSpec((1, c_half, tile_hw), lambda i, j: (i, 0, j)),
        compiler_params=pltpu.CompilerParams(
            dimension_semantics=("parallel", "parallel"),
        ),
    )(x_split)

    if hw_pad != hw:
        out_flat = out_flat[:, :, :hw]
    return out_flat.reshape(n, c_half, h, w)


if __name__ == "__main__":
    key = jax.random.PRNGKey(0)
    # NCHW input, matching the PyTorch module convention.
    x = jax.random.normal(key, (2, 4, 16, 16), dtype=jnp.float32)

    out = gated_activation(x)
    jax.block_until_ready(out)

    # Reference check in plain JAX (same semantics as the PyTorch forward).
    c = x.shape[1]
    ref = jnp.tanh(x[:, : c // 2]) * jax.nn.sigmoid(x[:, c // 2 :])
    assert out.shape == (2, 2, 16, 16)
    assert jnp.allclose(out, ref, atol=1e-5, rtol=1e-5), "mismatch vs reference"

    print("KERNEL_OK")
</pallas_src>

<mosaic_0001>
module attributes {stable_mosaic.version = 11 : i64} {
  func.func @_gated_activation_kernel(%arg0: i32, %arg1: i32, %arg2: memref<1x2x2x256xf32, #tpu.memory_space<vmem>>, %arg3: memref<1x2x256xf32, #tpu.memory_space<vmem>>) attributes {dimension_semantics = [#tpu.dimension_semantics<parallel>, #tpu.dimension_semantics<parallel>], iteration_bounds = array<i64: 2, 1>, scalar_prefetch = 0 : i64, scratch_operands = 0 : i64, tpu.core_type = #tpu.core_type<tc>, window_params = [{transform_indices = @transform_0, window_bounds = array<i64: 1, 2, 2, 256>}, {transform_indices = @transform_1, window_bounds = array<i64: 1, 2, 256>}]} {
    %c0 = arith.constant 0 : index
    %c0_0 = arith.constant 0 : index
    %c0_1 = arith.constant 0 : index
    %c0_2 = arith.constant 0 : index
    %0 = vector.load %arg2[%c0, %c0_0, %c0_1, %c0_2] : memref<1x2x2x256xf32, #tpu.memory_space<vmem>>, vector<1x1x2x256xf32>
    %1 = vector.shape_cast %0 : vector<1x1x2x256xf32> to vector<2x256xf32>
    %c0_3 = arith.constant 0 : index
    %c1 = arith.constant 1 : index
    %c0_4 = arith.constant 0 : index
    %c0_5 = arith.constant 0 : index
    %2 = vector.load %arg2[%c0_3, %c1, %c0_4, %c0_5] : memref<1x2x2x256xf32, #tpu.memory_space<vmem>>, vector<1x1x2x256xf32>
    %3 = vector.shape_cast %2 : vector<1x1x2x256xf32> to vector<2x256xf32>
    %cst = arith.constant 5.000000e-01 : f32
    %4 = vector.broadcast %cst : f32 to vector<2x256xf32>
    %5 = arith.mulf %4, %3 : vector<2x256xf32>
    %6 = math.tanh %5 : vector<2x256xf32>
    %cst_6 = arith.constant 1.000000e+00 : f32
    %7 = vector.broadcast %cst_6 : f32 to vector<2x256xf32>
    %8 = arith.addf %6, %7 : vector<2x256xf32>
    %cst_7 = arith.constant 5.000000e-01 : f32
    %9 = vector.broadcast %cst_7 : f32 to vector<2x256xf32>
    %10 = arith.mulf %9, %8 : vector<2x256xf32>
    %11 = math.tanh %1 : vector<2x256xf32>
    %12 = arith.mulf %11, %10 : vector<2x256xf32>
    %c0_8 = arith.constant 0 : index
    %c0_9 = arith.constant 0 : index
    %c0_10 = arith.constant 0 : index
    %13 = vector.load %arg3[%c0_8, %c0_9, %c0_10] : memref<1x2x256xf32, #tpu.memory_space<vmem>>, vector<1x2x256xf32>
    %14 = vector.shape_cast %13 : vector<1x2x256xf32> to vector<2x256xf32>
    %15 = vector.shape_cast %12 : vector<2x256xf32> to vector<1x2x256xf32>
    tpu.vector_store %arg3[%c0_8, %c0_9, %c0_10], %15 {strides = array<i32>} : memref<1x2x256xf32, #tpu.memory_space<vmem>>, vector<1x2x256xf32>,
    return
  }
  func.func @transform_0(%arg0: i32, %arg1: i32) -> (i32, i32, i32, i32) {
    %c0_i32 = arith.constant 0 : i32
    %c0_i32_0 = arith.constant 0 : i32
    %c0_i32_1 = arith.constant 0 : i32
    return %arg0, %c0_i32, %c0_i32_0, %arg1 : i32, i32, i32, i32
  }
  func.func @transform_1(%arg0: i32, %arg1: i32) -> (i32, i32, i32) {
    %c0_i32 = arith.constant 0 : i32
    %c0_i32_0 = arith.constant 0 : i32
    return %arg0, %c0_i32, %arg1 : i32, i32, i32
  }
}

</mosaic_0001>

<bundles_post_ra>
// kernel: tpu_custom_call.1
= control target key start
LH: loop header
LB: loop body
LE: loop exit
PB: predicated region body
PF: predicated region fallthrough
CT: control target
= control target key end

     0   :  { %6 = vsyncpa [#allocation3], 0  ;;  %s654_s0 = inlined_call_operand.hbm [shape: f32[2,2,2,256], index: 0, kind: input, shape index: {}]   ;;  %s655_s1 = inlined_call_operand.hbm [shape: f32[2,2,256], index: 1, kind: output, shape index: {}]  }
   0x1   :  { %8 = vsyncpa [#allocation3 + $0x1], 0 }
   0x2   :  { %9 = vsyncpa [#allocation4], 0 }
   0x3   :  { %11 = vsyncpa [#allocation4 + $0x1], 0  ;;  %s480_s6 = smov 0   ;;  %s482_s7 = smov 0  }
   0x4   :  { %s484_s8 = smov 0   ;;  %s486_s9 = smov 0  }
   0x5   :  { %s488_s10 = smov 0   ;;  %s490_s11 = smov 0  }
   0x6 LB: > { %s266_s12 = sadd.s32 4294967295, %s464_s11   ;;  %s267_s13 = sadd.s32 4294967294, %s464_s11   ;;  %s464_s11 = sphi %s490_s11, %s17_s11   ;;  %s460_s10 = sphi %s488_s10, %s670_s10   ;;  %s456_s9 = sphi %s486_s9, %s669_s9   ;;  %s452_s8 = sphi %s484_s8, %s668_s8   ;;  %s448_s7 = sphi %s482_s7, %s667_s7   ;;  %s444_s6 = sphi %s480_s6, %s666_s6  }
   0x7   : > { %s29_s14 = sadd.s32 1, %s460_s10  ;;  %s38_s15 = sadd.s32 1, %s452_s8 }
   0x8   : > { %p31_p0 = scmp.ge.s32.totalorder %s29_s14, 2  ;;  %p45_p1 = scmp.ne.s32.totalorder %s452_s8, %s448_s7 }
   0x9   : > { %p46_p2 = scmp.eq.s32.totalorder %s464_s11, 0  ;;  %p51_p3 = scmp.ne.s32.totalorder %s448_s7, %s444_s6 }
   0xa   : > { %s672_s14 = smov (%p31_p0, %s29_s14), 0  ;;  %p52_p5 = scmp.eq.s32.totalorder %s266_s12, 0 }
   0xb   : > { %p521_p4 = por %p46_p2, %p45_p1  ;;  %s33_s17 = ssub.s32 %s460_s10, %s672_s14 }
   0xc   : > { %p77_p6 = scmp.eq.s32.totalorder %s266_s12, 1  ;;  %p36_p7 = scmp.eq.s32.totalorder %s33_s17, 0 }
   0xd   : > { %p527_p8 = por %p52_p5, %p51_p3  ;;  %p83_p10 = scmp.eq.s32.totalorder %s267_s13, 1 }
   0xe   : > { %p531_p9 = por %p77_p6, %p45_p1  ;;  %p296_p13 = scmp.lt.s32.totalorder %s464_s11, 2 }
   0xf   : > { %s536_s20 = scalar_select %p36_p7, %s452_s8, %s38_s15  }
  0x10   : > { %s659_s19 = scalar_select %p531_p9, 1, 0 }
  0x11   : > { %p538_p11 = por %p83_p10, %p51_p3  ;;  %s103_s22 = sand.u32 1, %s452_s8  }
  0x12   : > { %s270_s23 = sshll.u32 %s103_s22, 3  ;;  %s282_s24 = sshll.u32 %s460_s10, 7 }
  0x13   : > { %s660_s21 = scalar_select %p538_p11, 1, 0 }
  0x14   : > { %s549_s27 = scalar_lea.hbm %s654_s0, %s282_s24  ;;  %s107_s28 = scalar_lea.vmem [#allocation2], %s270_s23 }
  0x15   : > { %s116_s29 = sshll.u32 %s107_s28, 4  ;;  %p555_p0 = pnand %p296_p13, %p521_p4  ;;  %s551_s29 = int_to_ptr.vmem [resolvable:$true] %s116_s29 }
  0x16   : > { %s560_s2 = scalar_lea.sflag [#allocation3], %s103_s22  ;;  %s352_s3 = scalar_lea.hbm %s549_s27, 128 }
  0x17   : > { %p353_p2 = scmp.ne.s32.totalorder %s549_s27, %s352_s3  ;;  %p354_p3 = pneg %p555_p0 }
  0x18   : > { %s357_s12 = scalar_lea.hbm %s654_s0, 256  ;;  %p358_p4 = scmp.lt.u32.totalorder %s549_s27, %s654_s0 }
  0x19   : > { %p355_p5 = pnand %p354_p3, %p353_p2  ;;  %p359_p7 = scmp.lt.u32.totalorder %s357_s12, %s352_s3 }
  0x1a   : > { %p361_p13 = scmp.lt.u32.totalorder %s352_s3, %s549_s27 }
  0x1b   : > { %p356_p6 = pneg %p355_p5  ;;  %p360_p10 = por %p359_p7, %p358_p4 }
  0x1d   : > { %p362_p12 = por %p361_p13, %p360_p10 }
  0x1f   : > { %p363_p1 = pnand %p362_p12, %p356_p6 }
  0x21   : > { %366 = shalt.err (!%p363_p1)
}
  0x22   : > { %s367_s16 = scalar_lea.vmem %s551_s29, 128  ;;  %s466_s17 = smov [#allocation2]  }
  0x23   : > { %p368_p2 = scmp.ne.s32.totalorder %s551_s29, %s367_s16  ;;  %s372_s22 = sshll.u32 %s466_s17, 4  ;;  %s373_s22 = int_to_ptr.vmem [resolvable:$false] %s372_s22 }
  0x24   : > { %s374_s23 = scalar_lea.vmem %s373_s22, 256  ;;  %p375_p9 = scmp.lt.s32.totalorder %s551_s29, %s373_s22 }
  0x25   : > { %p370_p5 = pnand %p368_p2, %p354_p3  ;;  %p376_p4 = scmp.lt.s32.totalorder %s374_s23, %s367_s16 }
  0x27   : > { %p371_p11 = pneg %p370_p5  ;;  %p377_p7 = por %p376_p4, %p375_p9 }
  0x29   : > { %p378_p10 = pnand %p377_p7, %p371_p11 }
  0x2b   : > { %381 = shalt.err (!%p378_p10)
}
  0x2c   : > { %s467_s24 = smov 64   ;;  %s468_s25 = smov 4  }
  0x2d   : > { %291 = dma.hbm_to_vmem [thread:$0]  (!%p555_p0), %s549_s27, 128, %s551_s29, %s560_s2, %s467_s24, %s467_s24, %s468_s25  }
  0x2e   : > { %p124_p12 = scmp.lt.s32.totalorder %s464_s11, 3  ;;  %p662_p1 = scmp.ge.s32.totalorder %s464_s11, 1 }
  0x30   : > { %p125_p3 = pnand %p662_p1, %p124_p12 }
  0x31   : > { %s592_s26 = sand.u32 (!%p125_p3), 1, %s448_s7  }
  0x32   : > { %128 = sbr.rel (%p125_p3) target bundleno = 92 (0x5c), region = 24  ;;  %s274_s28 = sshll.u32 (!%p125_p3), %s592_s26, 3 }
  0x33   : > { %s131_s3 = scalar_lea.sflag (!%p125_p3), [#allocation3], %s592_s26  ;;  %s134_s4 = scalar_lea.vmem (!%p125_p3), [#allocation2], %s274_s28 }
  0x39   : > { %435 = dma.done.wait (%p527_p8), %s131_s3, 128  }
  0x3a   : > { %437 = vsyncadd (%p527_p8), %s131_s3, 4294967168  ;;  %v276_v0 = vld [vmem:[%s134_s4 + $0x4] sm:$0xf]  ;;  %v155_v2 = vld [vmem:[%s134_s4] sm:$0xf]  ;;  %s275_s27 = sshll.u32 %s592_s26, 2 }
  0x3b   : > { %v158_v1 = vmul.f32 0.5, %v276_v0  ;;  %s152_s29 = scalar_lea.vmem [#allocation5], %s275_s27  ;;  %s283_s2 = sshll.u32 %s456_s9, 6 }
  0x3c   : > { %s182_s30 = sshll.u32 %s152_s29, 4  ;;  %s607_s12 = scalar_lea.hbm %s655_s1, %s283_s2  ;;  %s602_s30 = int_to_ptr.vmem [resolvable:$true] %s182_s30 }
  0x3d   : > { %348 = vtanh.f32 %v158_v1  ;;  %s166_s13 = scalar_lea.sflag [#allocation4], %s592_s26  ;;  %s382_s15 = scalar_lea.vmem %s602_s30, 64 }
  0x3e   : > { %350 = vtanh.f32 %v155_v2  ;;  %p383_p8 = scmp.ne.s32.totalorder %s602_s30, %s382_s15  ;;  %p663_p9 = scmp.ne.s32.totalorder %s659_s19, 0 }
  0x3f   : > { %s469_s9 = smov [#allocation5]  }
  0x40   : > { %p384_p11 = pnand %p383_p8, %p663_p9  ;;  %s386_s16 = sshll.u32 %s469_s9, 4  ;;  %s387_s16 = int_to_ptr.vmem [resolvable:$false] %s386_s16 }
  0x41   : > { %s388_s17 = scalar_lea.vmem %s387_s16, 128  ;;  %p389_p6 = scmp.lt.s32.totalorder %s602_s30, %s387_s16 }
  0x42   : > { %p385_p0 = pneg %p384_p11  ;;  %p390_p13 = scmp.lt.s32.totalorder %s388_s17, %s382_s15 }
  0x44   : > { %p391_p2 = por %p390_p13, %p389_p6 }
  0x46   : > { %p392_p5 = pnand %p391_p2, %p385_p0 }
  0x47   : > { %v349_v3 = vpop.eup %348 }
  0x48   : > { %v160_v4 = vadd.f32 1.0, %v349_v3  ;;  %v351_v5 = vpop.eup %350 }
  0x4a   : > { %v161_v6 = vmul.f32 0.5, %v160_v4 }
  0x4c   : > { %v163_v7 = vmul.f32 %v351_v5, %v161_v6 }
  0x4e   : > { %164 = vst [vmem:[%s152_s29] sm:$0xf] %v163_v7 }
  0x4f   : > { %395 = shalt.err (!%p392_p5)
}
  0x50   : > { %s396_s22 = scalar_lea.hbm %s607_s12, 64  ;;  %s400_s25 = scalar_lea.hbm %s655_s1, 128 }
  0x51   : > { %p397_p4 = scmp.ne.s32.totalorder %s607_s12, %s396_s22  ;;  %p401_p12 = scmp.lt.u32.totalorder %s607_s12, %s655_s1 }
  0x52   : > { %p402_p1 = scmp.lt.u32.totalorder %s400_s25, %s396_s22  ;;  %p404_p8 = scmp.lt.u32.totalorder %s396_s22, %s607_s12 }
  0x53   : > { %p398_p7 = pnand %p397_p4, %p663_p9 }
  0x54   : > { %p403_p3 = por %p402_p1, %p401_p12 }
  0x55   : > { %p399_p10 = pneg %p398_p7 }
  0x56   : > { %p405_p11 = por %p404_p8, %p403_p3 }
  0x58   : > { %p406_p0 = pnand %p405_p11, %p399_p10 }
  0x5a   : > { %409 = shalt.err (!%p406_p0)
}
  0x5b   : > { %286 = dma.vmem_to_hbm [thread:$0]  (%p663_p9), %s602_s30, 64, %s607_s12, %s166_s13  }
  0x5c PF: > { %s194_s3 = sand.u32 1, %s444_s6   ;;  %p664_p6 = scmp.ne.s32.totalorder %s660_s21, 0 }
  0x5d   : > { %p665_p13 = scmp.ge.s32.totalorder %s464_s11, 2  ;;  %s195_s4 = scalar_lea.sflag [#allocation4], %s194_s3 }
  0x5f   : > { %p293_p2 = pnand %p665_p13, %p664_p6 }
  0x61   : > { %439 = dma.done.wait (!%p293_p2), %s195_s4, 64  }
  0x62   : > { %441 = vsyncadd (!%p293_p2), %s195_s4, 4294967232  ;;  %s17_s11 = sadd.s32 1, %s464_s11   ;;  %s666_s6 = smov %s448_s7 }
  0x63   : > { %p14_p5 = scmp.ge.s32.totalorder %s17_s11, 4   ;;  %s667_s7 = smov %s452_s8 }
  0x64   : > { %s668_s8 = smov %s536_s20  ;;  %s669_s9 = smov %s460_s10 }
  0x65   : > { %s670_s10 = smov %s672_s14  ;;  %16 = sbr.rel (!%p14_p5) target bundleno = 6 (0x6), region = 70 }
  0x6c   :  { %200 = vsyncpa [#allocation3], 1 }
  0x6d   :  { %202 = vsyncpa [#allocation3 + $0x1], 1 }
  0x6e   :  { %203 = vsyncpa [#allocation4], 1 }
  0x6f   :  { %205 = vsyncpa [#allocation4 + $0x1], 1 }

</bundles_post_ra>
